<compile_context>
chip_gen: v7x
topology: tpu7x:2x2x1
jax: 0.10.0
libtpu: 0.0.40
codegen_flags: <defaults>
</compile_context>

<pallas_src>
import functools
import math

import jax
import jax.numpy as jnp
import numpy as np
from jax.experimental import pallas as pl
from jax.experimental.pallas import tpu as pltpu

LN_EPS = 1e-12


def masked_attention_kernel(xu_ref, xt_ref, w_ref, vec_ref, out_ref, *, m, inv_sqrt_d):
    xu = xu_ref[...]                          # [N, d]  (unknown, N = b*m)
    xt = xt_ref[...]                          # [N, d]  (truth)
    N, d = xu.shape

    wq = w_ref[0]                             # [d, d]  (leading-axis index: clean load)
    wk = w_ref[1]
    wv = w_ref[2]
    wo = w_ref[3]

    vec = vec_ref[...]                        # [6, d]
    bq = vec[0:1, :]
    bk = vec[1:2, :]
    bv = vec[2:3, :]
    bo = vec[3:4, :]
    gamma = vec[4:5, :]
    beta = vec[5:6, :]

    # --- projections: five tiny d x d dots (MXU idle at this size; no lane slicing) --
    q = jnp.dot(xu, wq, preferred_element_type=jnp.float32) + bq
    ku = jnp.dot(xu, wk, preferred_element_type=jnp.float32) + bk
    vu = jnp.dot(xu, wv, preferred_element_type=jnp.float32) + bv
    kt = jnp.dot(xt, wk, preferred_element_type=jnp.float32) + bk
    vt = jnp.dot(xt, wv, preferred_element_type=jnp.float32) + bv

    # --- attention scores ------------------------------------------------------------
    # off-diagonal (same batch): q_i . kt_j ; diagonal: q_i . ku_i ; cross-batch: -inf
    s1 = jax.lax.dot_general(q, kt, (((1,), (1,)), ((), ())),
                             preferred_element_type=jnp.float32)             # [N, N]
    s2 = jnp.sum(q * ku, axis=-1, keepdims=True)                             # [N, 1]

    row = jax.lax.broadcasted_iota(jnp.int32, (N, N), 0)
    col = jax.lax.broadcasted_iota(jnp.int32, (N, N), 1)
    diag = row == col
    # batch id via float floor (avoids vector integer division); +0.5 makes the
    # boundary rounding-proof for any reasonable N.
    inv_m = 1.0 / float(m)
    rb = jnp.floor((row.astype(jnp.float32) + 0.5) * inv_m)
    cb = jnp.floor((col.astype(jnp.float32) + 0.5) * inv_m)
    same_batch = rb == cb

    scores = jnp.where(diag, s2, jnp.where(same_batch, s1, -jnp.inf))
    scores = scores * inv_sqrt_d
    # TODO(synk): attention_mask=None path only; a real per-key padding mask would need
    # an extra additive bias input here.

    # --- softmax over keys (exact division; exp(-inf) == 0 keeps batches separate) ----
    smax = jnp.max(scores, axis=-1, keepdims=True)
    e = jnp.exp(scores - smax)
    probs = e / jnp.sum(e, axis=-1, keepdims=True)

    # --- value aggregation with the diagonal swapped to "unknown" values --------------
    probs_off = jnp.where(diag, 0.0, probs)
    p_diag = jnp.sum(jnp.where(diag, probs, 0.0), axis=-1, keepdims=True)    # [N, 1]
    context = jnp.dot(probs_off, vt,
                      preferred_element_type=jnp.float32) + p_diag * vu      # [N, d]

    # --- BertSelfOutput: dense + LayerNorm (input_tensor=None, dropout=identity) ------
    h = jnp.dot(context, wo, preferred_element_type=jnp.float32) + bo
    mu = jnp.mean(h, axis=-1, keepdims=True)
    var = jnp.mean((h - mu) * (h - mu), axis=-1, keepdims=True)
    h = (h - mu) * jax.lax.rsqrt(var + LN_EPS) * gamma + beta

    out_ref[...] = h.astype(out_ref.dtype)


def prepare_params(params):
    """One-time parameter fusion (done at init, NOT per forward call)."""
    w_all = jnp.stack(
        [params["wq"], params["wk"], params["wv"], params["wo"]], axis=0)    # [4, d, d]
    vec_all = jnp.concatenate(
        [params["bq"], params["bk"], params["bv"],
         params["bo"], params["gamma"], params["beta"]], axis=0)             # [6, d]
    return {"w_all": w_all, "vec_all": vec_all}


def masked_attention(xt, xu, fused):
    b, m, d = xt.shape
    N = b * m

    # batch folded into rows (free metadata reshapes)
    xu2 = xu.reshape(N, d)
    xt2 = xt.reshape(N, d)

    kernel = functools.partial(masked_attention_kernel,
                               m=m, inv_sqrt_d=1.0 / math.sqrt(d))

    out = pl.pallas_call(
        kernel,
        out_shape=jax.ShapeDtypeStruct((N, d), jnp.float32),
        grid=(1,),
        in_specs=[
            pl.BlockSpec((N, d), lambda i: (0, 0)),          # xu2
            pl.BlockSpec((N, d), lambda i: (0, 0)),          # xt2
            pl.BlockSpec((4, d, d), lambda i: (0, 0, 0)),    # w_all (wq,wk,wv,wo)
            pl.BlockSpec((6, d), lambda i: (0, 0)),          # vec_all (bq,bk,bv,bo,g,b)
        ],
        out_specs=pl.BlockSpec((N, d), lambda i: (0, 0)),
        compiler_params=pltpu.CompilerParams(dimension_semantics=("arbitrary",)),
    )(xu2, xt2, fused["w_all"], fused["vec_all"])

    return out.reshape(b, m, d)


def reference(xt, xu, params):
    """Pure-JAX replica of MaskedAttention.forward (eval mode, no mask)."""
    b, m, d = xt.shape
    lin = lambda x, w, bias: x @ w + bias
    q = lin(xu, params["wq"], params["bq"])
    ku = lin(xu, params["wk"], params["bk"])
    vu = lin(xu, params["wv"], params["bv"])
    kt = lin(xt, params["wk"], params["bk"])
    vt = lin(xt, params["wv"], params["bv"])
    eye = jnp.eye(m, dtype=jnp.float32)
    s1 = jnp.einsum("bik,bjk->bij", q, kt)
    s2 = jnp.sum(q * ku, axis=-1, keepdims=True) * jnp.ones((b, m, m))
    scores = (s1 * (1 - eye) + s2 * eye) / math.sqrt(d)
    probs = jax.nn.softmax(scores, axis=-1)
    eye_exp = eye[:, :, None]
    vt_exp = vt[:, None, :, :] * jnp.ones((b, m, m, d))
    vu_exp = vu[:, None, :, :] * jnp.ones((b, m, m, d))
    vals = vt_exp * (1 - eye_exp) + vu_exp * eye_exp
    context = jnp.einsum("bijd,bij->bid", vals, probs)
    h = context @ params["wo"] + params["bo"]
    mu = jnp.mean(h, axis=-1, keepdims=True)
    var = jnp.mean((h - mu) ** 2, axis=-1, keepdims=True)
    return (h - mu) / jnp.sqrt(var + LN_EPS) * params["gamma"] + params["beta"]


def init_params(key, d):
    ks = jax.random.split(key, 8)
    scale = 1.0 / math.sqrt(d)
    return {
        # weights stored as [in, out] (PyTorch Linear weight transposed)
        "wq": jax.random.normal(ks[0], (d, d), jnp.float32) * scale,
        "bq": jax.random.normal(ks[1], (1, d), jnp.float32) * 0.01,
        "wk": jax.random.normal(ks[2], (d, d), jnp.float32) * scale,
        "bk": jax.random.normal(ks[3], (1, d), jnp.float32) * 0.01,
        "wv": jax.random.normal(ks[4], (d, d), jnp.float32) * scale,
        "bv": jax.random.normal(ks[5], (1, d), jnp.float32) * 0.01,
        "wo": jax.random.normal(ks[6], (d, d), jnp.float32) * scale,
        "bo": jax.random.normal(ks[7], (1, d), jnp.float32) * 0.01,
        "gamma": jnp.ones((1, d), jnp.float32),
        "beta": jnp.zeros((1, d), jnp.float32),
    }


if __name__ == "__main__":
    # config: hidden_size=32, label_emb=0 (required so BertSelfOutput dims match),
    # layer_norm_eps=1e-12, dropouts=0 (eval).
    batch, seq, hidden = 2, 8, 32
    key = jax.random.PRNGKey(0)
    k1, k2, k3 = jax.random.split(key, 3)
    hs_truth = jax.random.normal(k1, (batch, seq, hidden), jnp.float32)
    hs_unknown = jax.random.normal(k2, (batch, seq, hidden), jnp.float32)
    params = init_params(k3, hidden)

    fused = prepare_params(params)            # one-time weight/bias fusion
    out = masked_attention(hs_truth, hs_unknown, fused)
    out = jax.block_until_ready(out)

    ref = reference(hs_truth, hs_unknown, params)
    np.testing.assert_allclose(np.asarray(out), np.asarray(ref), rtol=1e-4, atol=1e-5)

    print("KERNEL_OK")
</pallas_src>

<mosaic_0001>
module attributes {stable_mosaic.version = 11 : i64} {
  func.func @masked_attention_kernel(%arg0: i32, %arg1: memref<16x32xf32, #tpu.memory_space<vmem>>, %arg2: memref<16x32xf32, #tpu.memory_space<vmem>>, %arg3: memref<4x32x32xf32, #tpu.memory_space<vmem>>, %arg4: memref<6x32xf32, #tpu.memory_space<vmem>>, %arg5: memref<16x32xf32, #tpu.memory_space<vmem>>) attributes {dimension_semantics = [#tpu.dimension_semantics<arbitrary>], iteration_bounds = array<i64: 1>, scalar_prefetch = 0 : i64, scratch_operands = 0 : i64, tpu.core_type = #tpu.core_type<tc>, window_params = [{pipeline_mode = #tpu.pipeline_mode<synchronous>, transform_indices = @transform_0, window_bounds = array<i64: 16, 32>}, {pipeline_mode = #tpu.pipeline_mode<synchronous>, transform_indices = @transform_1, window_bounds = array<i64: 16, 32>}, {pipeline_mode = #tpu.pipeline_mode<synchronous>, transform_indices = @transform_2, window_bounds = array<i64: 4, 32, 32>}, {pipeline_mode = #tpu.pipeline_mode<synchronous>, transform_indices = @transform_3, window_bounds = array<i64: 6, 32>}, {pipeline_mode = #tpu.pipeline_mode<synchronous>, transform_indices = @transform_4, window_bounds = array<i64: 16, 32>}]} {
    %c0 = arith.constant 0 : index
    %c0_0 = arith.constant 0 : index
    %0 = vector.load %arg1[%c0, %c0_0] : memref<16x32xf32, #tpu.memory_space<vmem>>, vector<16x32xf32>
    %c0_1 = arith.constant 0 : index
    %c0_2 = arith.constant 0 : index
    %1 = vector.load %arg2[%c0_1, %c0_2] : memref<16x32xf32, #tpu.memory_space<vmem>>, vector<16x32xf32>
    %c0_3 = arith.constant 0 : index
    %c0_4 = arith.constant 0 : index
    %c0_5 = arith.constant 0 : index
    %2 = vector.load %arg3[%c0_3, %c0_4, %c0_5] : memref<4x32x32xf32, #tpu.memory_space<vmem>>, vector<1x32x32xf32>
    %3 = vector.shape_cast %2 : vector<1x32x32xf32> to vector<32x32xf32>
    %c1 = arith.constant 1 : index
    %c0_6 = arith.constant 0 : index
    %c0_7 = arith.constant 0 : index
    %4 = vector.load %arg3[%c1, %c0_6, %c0_7] : memref<4x32x32xf32, #tpu.memory_space<vmem>>, vector<1x32x32xf32>
    %5 = vector.shape_cast %4 : vector<1x32x32xf32> to vector<32x32xf32>
    %c2 = arith.constant 2 : index
    %c0_8 = arith.constant 0 : index
    %c0_9 = arith.constant 0 : index
    %6 = vector.load %arg3[%c2, %c0_8, %c0_9] : memref<4x32x32xf32, #tpu.memory_space<vmem>>, vector<1x32x32xf32>
    %7 = vector.shape_cast %6 : vector<1x32x32xf32> to vector<32x32xf32>
    %c3 = arith.constant 3 : index
    %c0_10 = arith.constant 0 : index
    %c0_11 = arith.constant 0 : index
    %8 = vector.load %arg3[%c3, %c0_10, %c0_11] : memref<4x32x32xf32, #tpu.memory_space<vmem>>, vector<1x32x32xf32>
    %9 = vector.shape_cast %8 : vector<1x32x32xf32> to vector<32x32xf32>
    %c0_12 = arith.constant 0 : index
    %c0_13 = arith.constant 0 : index
    %10 = vector.load %arg4[%c0_12, %c0_13] : memref<6x32xf32, #tpu.memory_space<vmem>>, vector<6x32xf32>
    %11 = vector.extract_strided_slice %10 {offsets = [0, 0], sizes = [1, 32], strides = [1, 1]} : vector<6x32xf32> to vector<1x32xf32>
    %12 = vector.extract_strided_slice %10 {offsets = [1, 0], sizes = [1, 32], strides = [1, 1]} : vector<6x32xf32> to vector<1x32xf32>
    %13 = vector.extract_strided_slice %10 {offsets = [2, 0], sizes = [1, 32], strides = [1, 1]} : vector<6x32xf32> to vector<1x32xf32>
    %14 = vector.extract_strided_slice %10 {offsets = [3, 0], sizes = [1, 32], strides = [1, 1]} : vector<6x32xf32> to vector<1x32xf32>
    %15 = vector.extract_strided_slice %10 {offsets = [4, 0], sizes = [1, 32], strides = [1, 1]} : vector<6x32xf32> to vector<1x32xf32>
    %16 = vector.extract_strided_slice %10 {offsets = [5, 0], sizes = [1, 32], strides = [1, 1]} : vector<6x32xf32> to vector<1x32xf32>
    %cst = arith.constant dense<0.000000e+00> : vector<16x32xf32>
    %17 = tpu.matmul %0, %3, %cst {dimension_numbers = #tpu.dot_dimension_numbers<[1], [0], [0], [1], [0, 0, 1, 1], [], []>} : vector<16x32xf32>, vector<32x32xf32>, vector<16x32xf32> -> vector<16x32xf32>
    %18 = vector.broadcast %11 : vector<1x32xf32> to vector<16x32xf32>
    %19 = arith.addf %17, %18 : vector<16x32xf32>
    %cst_14 = arith.constant dense<0.000000e+00> : vector<16x32xf32>
    %20 = tpu.matmul %0, %5, %cst_14 {dimension_numbers = #tpu.dot_dimension_numbers<[1], [0], [0], [1], [0, 0, 1, 1], [], []>} : vector<16x32xf32>, vector<32x32xf32>, vector<16x32xf32> -> vector<16x32xf32>
    %21 = vector.broadcast %12 : vector<1x32xf32> to vector<16x32xf32>
    %22 = arith.addf %20, %21 : vector<16x32xf32>
    %cst_15 = arith.constant dense<0.000000e+00> : vector<16x32xf32>
    %23 = tpu.matmul %0, %7, %cst_15 {dimension_numbers = #tpu.dot_dimension_numbers<[1], [0], [0], [1], [0, 0, 1, 1], [], []>} : vector<16x32xf32>, vector<32x32xf32>, vector<16x32xf32> -> vector<16x32xf32>
    %24 = vector.broadcast %13 : vector<1x32xf32> to vector<16x32xf32>
    %25 = arith.addf %23, %24 : vector<16x32xf32>
    %cst_16 = arith.constant dense<0.000000e+00> : vector<16x32xf32>
    %26 = tpu.matmul %1, %5, %cst_16 {dimension_numbers = #tpu.dot_dimension_numbers<[1], [0], [0], [1], [0, 0, 1, 1], [], []>} : vector<16x32xf32>, vector<32x32xf32>, vector<16x32xf32> -> vector<16x32xf32>
    %27 = vector.broadcast %12 : vector<1x32xf32> to vector<16x32xf32>
    %28 = arith.addf %26, %27 : vector<16x32xf32>
    %cst_17 = arith.constant dense<0.000000e+00> : vector<16x32xf32>
    %29 = tpu.matmul %1, %7, %cst_17 {dimension_numbers = #tpu.dot_dimension_numbers<[1], [0], [0], [1], [0, 0, 1, 1], [], []>} : vector<16x32xf32>, vector<32x32xf32>, vector<16x32xf32> -> vector<16x32xf32>
    %30 = vector.broadcast %13 : vector<1x32xf32> to vector<16x32xf32>
    %31 = arith.addf %29, %30 : vector<16x32xf32>
    %cst_18 = arith.constant dense<0.000000e+00> : vector<16x16xf32>
    %32 = tpu.matmul %19, %28, %cst_18 {dimension_numbers = #tpu.dot_dimension_numbers<[1], [1], [0], [0], [0, 0, 1, 0], [], []>} : vector<16x32xf32>, vector<16x32xf32>, vector<16x16xf32> -> vector<16x16xf32>
    %33 = arith.mulf %19, %22 : vector<16x32xf32>
    %cst_19 = arith.constant dense<0.000000e+00> : vector<16xf32>
    %34 = vector.multi_reduction <add>, %33, %cst_19 [1] : vector<16x32xf32> to vector<16xf32>
    %35 = vector.shape_cast %34 : vector<16xf32> to vector<16x1xf32>
    %36 = tpu.iota {dimensions = array<i32: 0>} : vector<16x16xi32>
    %37 = tpu.iota {dimensions = array<i32: 1>} : vector<16x16xi32>
    %38 = arith.cmpi eq, %36, %37 : vector<16x16xi32>
    %39 = arith.sitofp %36 : vector<16x16xi32> to vector<16x16xf32>
    %cst_20 = arith.constant 5.000000e-01 : f32
    %40 = vector.broadcast %cst_20 : f32 to vector<16x16xf32>
    %41 = arith.addf %39, %40 : vector<16x16xf32>
    %cst_21 = arith.constant 1.250000e-01 : f32
    %42 = vector.broadcast %cst_21 : f32 to vector<16x16xf32>
    %43 = arith.mulf %41, %42 : vector<16x16xf32>
    %44 = math.floor %43 : vector<16x16xf32>
    %45 = arith.sitofp %37 : vector<16x16xi32> to vector<16x16xf32>
    %cst_22 = arith.constant 5.000000e-01 : f32
    %46 = vector.broadcast %cst_22 : f32 to vector<16x16xf32>
    %47 = arith.addf %45, %46 : vector<16x16xf32>
    %cst_23 = arith.constant 1.250000e-01 : f32
    %48 = vector.broadcast %cst_23 : f32 to vector<16x16xf32>
    %49 = arith.mulf %47, %48 : vector<16x16xf32>
    %50 = math.floor %49 : vector<16x16xf32>
    %51 = arith.cmpf oeq, %44, %50 : vector<16x16xf32>
    %cst_24 = arith.constant 0xFF800000 : f32
    %52 = vector.broadcast %cst_24 : f32 to vector<16x16xf32>
    %53 = arith.select %51, %32, %52 : vector<16x16xi1>, vector<16x16xf32>
    %54 = vector.shape_cast %35 : vector<16x1xf32> to vector<16x1xf32>
    %55 = vector.broadcast %54 : vector<16x1xf32> to vector<16x16xf32>
    %56 = arith.select %38, %55, %53 : vector<16x16xi1>, vector<16x16xf32>
    %cst_25 = arith.constant 0.176776692 : f32
    %57 = vector.broadcast %cst_25 : f32 to vector<16x16xf32>
    %58 = arith.mulf %56, %57 : vector<16x16xf32>
    %cst_26 = arith.constant dense<0xFF800000> : vector<16xf32>
    %59 = vector.multi_reduction <maximumf>, %58, %cst_26 [1] : vector<16x16xf32> to vector<16xf32>
    %60 = vector.shape_cast %59 : vector<16xf32> to vector<16x1xf32>
    %61 = vector.broadcast %60 : vector<16x1xf32> to vector<16x16xf32>
    %62 = arith.subf %58, %61 : vector<16x16xf32>
    %63 = math.exp %62 : vector<16x16xf32>
    %cst_27 = arith.constant dense<0.000000e+00> : vector<16xf32>
    %64 = vector.multi_reduction <add>, %63, %cst_27 [1] : vector<16x16xf32> to vector<16xf32>
    %65 = vector.shape_cast %64 : vector<16xf32> to vector<16x1xf32>
    %66 = vector.broadcast %65 : vector<16x1xf32> to vector<16x16xf32>
    %67 = arith.divf %63, %66 : vector<16x16xf32>
    %cst_28 = arith.constant 0.000000e+00 : f32
    %68 = vector.broadcast %cst_28 : f32 to vector<16x16xf32>
    %69 = arith.select %38, %68, %67 : vector<16x16xi1>, vector<16x16xf32>
    %cst_29 = arith.constant 0.000000e+00 : f32
    %70 = vector.broadcast %cst_29 : f32 to vector<16x16xf32>
    %71 = arith.select %38, %67, %70 : vector<16x16xi1>, vector<16x16xf32>
    %cst_30 = arith.constant dense<0.000000e+00> : vector<16xf32>
    %72 = vector.multi_reduction <add>, %71, %cst_30 [1] : vector<16x16xf32> to vector<16xf32>
    %73 = vector.shape_cast %72 : vector<16xf32> to vector<16x1xf32>
    %cst_31 = arith.constant dense<0.000000e+00> : vector<16x32xf32>
    %74 = tpu.matmul %69, %31, %cst_31 {dimension_numbers = #tpu.dot_dimension_numbers<[1], [0], [0], [1], [0, 0, 1, 1], [], []>} : vector<16x16xf32>, vector<16x32xf32>, vector<16x32xf32> -> vector<16x32xf32>
    %75 = vector.broadcast %73 : vector<16x1xf32> to vector<16x32xf32>
    %76 = arith.mulf %75, %25 : vector<16x32xf32>
    %77 = arith.addf %74, %76 : vector<16x32xf32>
    %cst_32 = arith.constant dense<0.000000e+00> : vector<16x32xf32>
    %78 = tpu.matmul %77, %9, %cst_32 {dimension_numbers = #tpu.dot_dimension_numbers<[1], [0], [0], [1], [0, 0, 1, 1], [], []>} : vector<16x32xf32>, vector<32x32xf32>, vector<16x32xf32> -> vector<16x32xf32>
    %79 = vector.broadcast %14 : vector<1x32xf32> to vector<16x32xf32>
    %80 = arith.addf %78, %79 : vector<16x32xf32>
    %cst_33 = arith.constant dense<0.000000e+00> : vector<16xf32>
    %81 = vector.multi_reduction <add>, %80, %cst_33 [1] : vector<16x32xf32> to vector<16xf32>
    %82 = vector.shape_cast %81 : vector<16xf32> to vector<16x1xf32>
    %cst_34 = arith.constant 3.200000e+01 : f32
    %83 = vector.broadcast %cst_34 : f32 to vector<16x1xf32>
    %84 = arith.divf %82, %83 : vector<16x1xf32>
    %85 = vector.broadcast %84 : vector<16x1xf32> to vector<16x32xf32>
    %86 = arith.subf %80, %85 : vector<16x32xf32>
    %87 = vector.broadcast %84 : vector<16x1xf32> to vector<16x32xf32>
    %88 = arith.subf %80, %87 : vector<16x32xf32>
    %89 = arith.mulf %86, %88 : vector<16x32xf32>
    %cst_35 = arith.constant dense<0.000000e+00> : vector<16xf32>
    %90 = vector.multi_reduction <add>, %89, %cst_35 [1] : vector<16x32xf32> to vector<16xf32>
    %91 = vector.shape_cast %90 : vector<16xf32> to vector<16x1xf32>
    %cst_36 = arith.constant 3.200000e+01 : f32
    %92 = vector.broadcast %cst_36 : f32 to vector<16x1xf32>
    %93 = arith.divf %91, %92 : vector<16x1xf32>
    %94 = vector.broadcast %84 : vector<16x1xf32> to vector<16x32xf32>
    %95 = arith.subf %80, %94 : vector<16x32xf32>
    %cst_37 = arith.constant 9.99999996E-13 : f32
    %96 = vector.broadcast %cst_37 : f32 to vector<16x1xf32>
    %97 = arith.addf %93, %96 : vector<16x1xf32>
    %98 = math.rsqrt %97 : vector<16x1xf32>
    %99 = vector.broadcast %98 : vector<16x1xf32> to vector<16x32xf32>
    %100 = arith.mulf %95, %99 : vector<16x32xf32>
    %101 = vector.broadcast %15 : vector<1x32xf32> to vector<16x32xf32>
    %102 = arith.mulf %100, %101 : vector<16x32xf32>
    %103 = vector.broadcast %16 : vector<1x32xf32> to vector<16x32xf32>
    %104 = arith.addf %102, %103 : vector<16x32xf32>
    %c0_38 = arith.constant 0 : index
    %c0_39 = arith.constant 0 : index
    %105 = vector.load %arg5[%c0_38, %c0_39] : memref<16x32xf32, #tpu.memory_space<vmem>>, vector<16x32xf32>
    tpu.vector_store %arg5[%c0_38, %c0_39], %104 {strides = array<i32>} : memref<16x32xf32, #tpu.memory_space<vmem>>, vector<16x32xf32>,
    return
  }
  func.func @transform_0(%arg0: i32) -> (i32, i32) {
    %c0_i32 = arith.constant 0 : i32
    %c0_i32_0 = arith.constant 0 : i32
    %c0_i32_1 = arith.constant 0 : i32
    return %c0_i32, %c0_i32_0 : i32, i32
  }
  func.func @transform_1(%arg0: i32) -> (i32, i32) {
    %c0_i32 = arith.constant 0 : i32
    %c0_i32_0 = arith.constant 0 : i32
    %c0_i32_1 = arith.constant 0 : i32
    return %c0_i32, %c0_i32_0 : i32, i32
  }
  func.func @transform_2(%arg0: i32) -> (i32, i32, i32) {
    %c0_i32 = arith.constant 0 : i32
    %c0_i32_0 = arith.constant 0 : i32
    %c0_i32_1 = arith.constant 0 : i32
    %c0_i32_2 = arith.constant 0 : i32
    return %c0_i32, %c0_i32_0, %c0_i32_1 : i32, i32, i32
  }
  func.func @transform_3(%arg0: i32) -> (i32, i32) {
    %c0_i32 = arith.constant 0 : i32
    %c0_i32_0 = arith.constant 0 : i32
    %c0_i32_1 = arith.constant 0 : i32
    return %c0_i32, %c0_i32_0 : i32, i32
  }
  func.func @transform_4(%arg0: i32) -> (i32, i32) {
    %c0_i32 = arith.constant 0 : i32
    %c0_i32_0 = arith.constant 0 : i32
    %c0_i32_1 = arith.constant 0 : i32
    return %c0_i32, %c0_i32_0 : i32, i32
  }
}

</mosaic_0001>

<bundles_post_ra>
// kernel: tpu_custom_call.1
= control target key start
LH: loop header
LB: loop body
LE: loop exit
PB: predicated region body
PF: predicated region fallthrough
CT: control target
= control target key end

     0   :  { %9 = vsyncpa [#allocation3], 0  ;;  %s1356_s0 = inlined_call_operand.hbm [shape: f32[16,32], index: 0, kind: input, shape index: {}]   ;;  %s1357_s1 = inlined_call_operand.hbm [shape: f32[16,32], index: 1, kind: input, shape index: {}]   ;;  %s1358_s2 = inlined_call_operand.hbm [shape: f32[4,32,32], index: 2, kind: input, shape index: {}]   ;;  %s1359_s3 = inlined_call_operand.vmem [shape: f32[6,32], index: 3, kind: input, shape index: {}]   ;;  %s1360_s4 = inlined_call_operand.hbm [shape: f32[16,32], index: 4, kind: output, shape index: {}]  }
   0x1   :  { %10 = vsyncpa [#allocation6], 0 }
   0x2   :  { %11 = vsyncpa [#allocation4], 0  ;;  %s1177_s15 = smov [#allocation5]   ;;  %s1178_s17 = smov [#allocation2]  }
   0x3   :  { %s29_s16 = sshll.u32 %s1177_s15, 4  ;;  %s17_s18 = sshll.u32 %s1178_s17, 4  ;;  %s30_s16 = int_to_ptr.vmem [resolvable:$true] %s29_s16  ;;  %s1208_s18 = int_to_ptr.vmem [resolvable:$true] %s17_s18 }
   0x4   :  { %s1083_s21 = scalar_lea.hbm %s1357_s1, 256 }
   0x5   :  { %p1084_p0 = scmp.ne.s32.totalorder %s1357_s1, %s1083_s21  ;;  %p1087_p1 = scmp.lt.u32.totalorder %s1083_s21, %s1357_s1 }
   0x7   :  { %p1089_p2 = pnand %p1087_p1, %p1084_p0 }
   0x9   :  { %1092 = shalt.err (!%p1089_p2)
}
   0xa   :  { %s1093_s26 = scalar_lea.vmem %s30_s16, 256  ;;  %p1098_p4 = scmp.lt.s32.totalorder %s30_s16, %s30_s16 }
   0xb   :  { %p1094_p3 = scmp.ne.s32.totalorder %s30_s16, %s1093_s26  ;;  %p1099_p5 = scmp.lt.s32.totalorder %s1093_s26, %s1093_s26 }
   0xd   :  { %p1100_p6 = por %p1099_p5, %p1098_p4 }
   0xf   :  { %p1101_p7 = pnand %p1100_p6, %p1094_p3 }
  0x11   :  { %1104 = shalt.err (!%p1101_p7)
}
  0x12   :  { %s1179_s27 = smov 128   ;;  %s1180_s28 = smov 8  }
  0x13   :  { %35 = dma.hbm_to_vmem [thread:$0]  %s1357_s1, 256, %s30_s16, [#allocation6], %s1179_s27, %s1179_s27, %s1180_s28  }
  0x14   :  { %s1105_s7 = scalar_lea.hbm %s1356_s0, 256 }
  0x15   :  { %p1106_p8 = scmp.ne.s32.totalorder %s1356_s0, %s1105_s7  ;;  %p1109_p9 = scmp.lt.u32.totalorder %s1105_s7, %s1356_s0 }
  0x17   :  { %p1111_p10 = pnand %p1109_p9, %p1106_p8 }
  0x19   :  { %1114 = shalt.err (!%p1111_p10)
}
  0x1a   :  { %s1115_s12 = scalar_lea.vmem %s1208_s18, 256  ;;  %p1120_p12 = scmp.lt.s32.totalorder %s1208_s18, %s1208_s18 }
  0x1b   :  { %p1116_p11 = scmp.ne.s32.totalorder %s1208_s18, %s1115_s12  ;;  %p1121_p13 = scmp.lt.s32.totalorder %s1115_s12, %s1115_s12 }
  0x1d   :  { %p1122_p0 = por %p1121_p13, %p1120_p12 }
  0x1f   :  { %p1123_p1 = pnand %p1122_p0, %p1116_p11 }
  0x21   :  { %1126 = shalt.err (!%p1123_p1)
}
  0x22   :  { %23 = dma.hbm_to_vmem [thread:$0]  %s1356_s0, 256, %s1208_s18, [#allocation3], %s1179_s27, %s1179_s27, %s1180_s28  }
  0x23   :  { %s1181_s14 = smov [#allocation7]   ;;  %s1127_s19 = scalar_lea.hbm %s1358_s2, 2048 }
  0x24   :  { %s41_s15 = sshll.u32 %s1181_s14, 4  ;;  %p1128_p2 = scmp.ne.s32.totalorder %s1358_s2, %s1127_s19  ;;  %s42_s15 = int_to_ptr.vmem [resolvable:$true] %s41_s15 }
  0x25   :  { %p1131_p3 = scmp.lt.u32.totalorder %s1127_s19, %s1358_s2 }
  0x27   :  { %p1133_p4 = pnand %p1131_p3, %p1128_p2 }
  0x29   :  { %1136 = shalt.err (!%p1133_p4)
}
  0x2a   :  { %s1137_s24 = scalar_lea.vmem %s42_s15, 2048  ;;  %p1142_p6 = scmp.lt.s32.totalorder %s42_s15, %s42_s15 }
  0x2b   :  { %p1138_p5 = scmp.ne.s32.totalorder %s42_s15, %s1137_s24  ;;  %p1143_p7 = scmp.lt.s32.totalorder %s1137_s24, %s1137_s24 }
  0x2d   :  { %p1144_p8 = por %p1143_p7, %p1142_p6 }
  0x2f   :  { %p1145_p9 = pnand %p1144_p8, %p1138_p5 }
  0x31   :  { %1148 = shalt.err (!%p1145_p9)
}
  0x32   :  { %47 = dma.hbm_to_vmem [thread:$0]  %s1358_s2, 2048, %s42_s15, [#allocation6], %s1179_s27, %s1179_s27, %s1180_s28  }
  0x33   :  { %1171 = dma.done.wait [#allocation3], 256  }
  0x34   :  { %1172 = vsyncadd [#allocation3], 4294967040 }
  0x35   :  { %1173 = dma.done.wait [#allocation6], 2304  }
  0x36   :  { %1174 = vsyncadd [#allocation6], 4294964992  ;;  %v63_v0 = vld [vmem:[#allocation7] sm:$0xff]  ;;  %v64_v1 = vld [vmem:[#allocation7 + $0x8] sm:$0xff]  ;;  %vm87_vm0 = vcmask 261120   ;;  %v83_v16 = vlaneseq  ;;  %vm605_vm6 = vcmask 130048  }
  0x37   :  { %v68_v2 = vld [vmem:[#allocation7 + $0x20] sm:$0xff]  ;;  %v1007_v3 = vpack.c.bf16 %v64_v1, %v63_v0  ;;  %v69_v4 = vld [vmem:[#allocation7 + $0x28] sm:$0xff]  ;;  %v65_v5 = vld [vmem:[#allocation7 + $0x10] sm:$0xff] }
  0x38   :  { %v66_v6 = vld [vmem:[#allocation7 + $0x18] sm:$0xff]  ;;  %v1015_v7 = vpack.c.bf16 %v69_v4, %v68_v2  ;;  %v70_v9 = vld [vmem:[#allocation7 + $0x30] sm:$0xff]  ;;  %v59_v11 = vld [vmem:[#allocation2] sm:$0xff]  ;;  %v1267_v17 = vshrl.u32 %v83_v16, 7  ;;  %v1290_v47 = vand.u32 127, %v83_v16 }
  0x39   :  { %v1011_v8 = vpack.c.bf16 %v66_v6, %v65_v5  ;;  %v71_v10 = vld [vmem:[#allocation7 + $0x38] sm:$0xff]  ;;  %1008 = vmatprep.subr.bf16.mxu0 %v1007_v3  ;;  %935 = vmatprep.mubr.msk.f32.mxu0 %vm87_vm0, %v59_v11  ;;  %v60_v13 = vld [vmem:[#allocation2 + $0x8] sm:$0xff]  ;;  %v61_v14 = vld [vmem:[#allocation5] sm:$0xff] }
  0x3a   :  { %v1019_v12 = vpack.c.bf16 %v71_v10, %v70_v9  ;;  %1016 = vmatprep.subr.bf16.mxu1 %v1015_v7  ;;  %1010 = vmatpush3.bf16.msra.mxu0 %v1007_v3  ;;  %v62_v15 = vld [vmem:[#allocation5 + $0x8] sm:$0xff]  ;;  %v85_v18 = vsub.s32 0, %v1267_v17  ;;  %v1273_v19 = vld [vmem:[%s1359_s3] sm:$0x3f]  ;;  %v171_v20 = vsub.s32 1, %v1267_v17  ;;  %vm1048_vm1 = vmpackc.low %vm87_vm0, %vm87_vm0  ;;  %v1288_v46 = vadd.s32 8, %v1267_v17 }
  0x3b   :  { %1018 = vmatpush3.bf16.msra.mxu1 %v1015_v7  ;;  %1012 = vmatprep.subr.bf16.mxu0 %v1011_v8  ;;  %v73_v40 = vld [vmem:[#allocation7 + $0x40] sm:$0xff]  ;;  %v74_v41 = vld [vmem:[#allocation7 + $0x48] sm:$0xff]  ;;  %v75_v42 = vld [vmem:[#allocation7 + $0x50] sm:$0xff]  ;;  %v593_v49 = vcvt.s32.f32 %v1290_v47  ;;  %v585_v50 = vcvt.s32.f32 %v1267_v17  ;;  %vm583_vm4 = vcmp.eq.s32.totalorder %v1267_v17, %v1290_v47  ;;  %s1182_s3 = smov [#allocation8]  }
  0x3c   :  { %1020 = vmatprep.subr.bf16.mxu1 %v1019_v12  ;;  %946 = vmatprep.mubr.msk.f32.mxu1 %vm87_vm0, %v59_v11  ;;  %v86_v21 = vrot.slane %v1273_v19, %v85_v18  ;;  %v172_v22 = vrot.slane %v1273_v19, %v171_v20  ;;  %v1023_v43 = vpack.c.bf16 %v74_v41, %v73_v40  ;;  %v76_v44 = vld [vmem:[#allocation7 + $0x58] sm:$0xff]  ;;  %v586_v48 = vcvt.s32.f32 %v1288_v46  ;;  %v78_v41 = vld [vmem:[#allocation7 + $0x60] sm:$0xff]  ;;  %s852_s26 = sshll.u32 %s1182_s3, 4  ;;  %s853_s26 = int_to_ptr.vmem [resolvable:$true] %s852_s26 }
  0x3d   :  { %v1027_v45 = vpack.c.bf16 %v76_v44, %v75_v42  ;;  %v594_v52 = vadd.f32 0.5, %v593_v49  ;;  %v587_v53 = vadd.f32 0.5, %v585_v50  ;;  %vm584_vm5 = vcmp.eq.s32.totalorder %v1288_v46, %v1290_v47  ;;  %v79_v42 = vld [vmem:[#allocation7 + $0x68] sm:$0xff]  ;;  %v80_v44 = vld [vmem:[#allocation7 + $0x70] sm:$0xff]  ;;  %s1149_s29 = scalar_lea.vmem %s853_s26, 256  ;;  %p1154_p11 = scmp.lt.s32.totalorder %s853_s26, %s853_s26 }
  0x3e   :  { %1014 = vmatpush3.bf16.msra.mxu0 %v1011_v8  ;;  %v588_v51 = vadd.f32 0.5, %v586_v48  ;;  %p1150_p10 = scmp.ne.s32.totalorder %s853_s26, %s1149_s29  ;;  %p1155_p12 = scmp.lt.s32.totalorder %s1149_s29, %s1149_s29 }
  0x3f   :  { %1022 = vmatpush3.bf16.msra.mxu1 %v1019_v12  ;;  %1024 = vmatprep.subr.bf16.mxu0 %v1023_v43  ;;  %v595_v55 = vmul.f32 0.125, %v594_v52  ;;  %v589_v56 = vmul.f32 0.125, %v587_v53 }
  0x40   :  { %1032 = vmatprep.subr.bf16.mxu1 %v1015_v7  ;;  %v590_v54 = vmul.f32 0.125, %v588_v51  ;;  %p1156_p13 = por %p1155_p12, %p1154_p11 }
  0x41   :  { %936 = vmatmul.mubr.msk.f32.vlgmr.msra.gmra.mrb[0].mxu0 %vm87_vm0, %v60_v13  ;;  %v596_v58 = vfloor.f32 %v595_v55  ;;  %v591_v59 = vfloor.f32 %v589_v56 }
  0x42   :  { %947 = vmatmul.mubr.msk.f32.vlgmr.msra.gmra.mrb[0].mxu1 %vm87_vm0, %v60_v13  ;;  %957 = vmatprep.mubr.msk.f32.mxu0 %vm87_vm0, %v59_v11  ;;  %v592_v57 = vfloor.f32 %v590_v54  ;;  %p1157_p0 = pnand %p1156_p13, %p1150_p10 }
  0x43   :  { %1034 = vmatpush3.bf16.msra.mxu1 %v1015_v7  ;;  %968 = vmatprep.mubr.msk.f32.mxu1 %vm87_vm0, %v61_v14  ;;  %vm597_vm3 = vcmp.eq.f32.partialorder %v591_v59, %v596_v58 }
  0x44   :  { %1036 = vmatprep.subr.bf16.mxu1 %v1019_v12  ;;  %1026 = vmatpush3.bf16.msra.mxu0 %v1023_v43  ;;  %vm598_vm2 = vcmp.eq.f32.partialorder %v592_v57, %v596_v58  ;;  %v723_v57 = vsub.s32 3, %v1267_v17 }
  0x45   :  { %1028 = vmatprep.subr.bf16.mxu0 %v1027_v45 }
  0x46   :  { %v724_v58 = vrot.slane %v1273_v19, %v723_v57 }
  0x47   :  { %1038 = vmatpush3.bf16.msra.mxu1 %v1019_v12 }
  0x48   :  { %1030 = vmatpush3.bf16.msra.mxu0 %v1027_v45 }
  0x49   :  { %1040 = vmatprep.subr.bf16.mxu0 %v1023_v43 }
  0x4a   :  { %969 = vmatmul.mubr.msk.f32.vlgmr.msra.gmra.mrb[2].mxu1 %vm87_vm0, %v62_v15 }
  0x4b   :  { %958 = vmatmul.mubr.msk.f32.vlgmr.msra.gmra.mrb[2].mxu0 %vm87_vm0, %v60_v13 }
  0x4c   :  { %1042 = vmatpush3.bf16.msra.mxu0 %v1023_v43  ;;  %979 = vmatprep.mubr.msk.f32.mxu0 %vm87_vm0, %v61_v14  ;;  %v1057_v43 = vpack.c.bf16 %v79_v42, %v78_v41 }
  0x4d   :  { %1044 = vmatprep.subr.bf16.mxu0 %v1027_v45 }
  0x50   :  { %1046 = vmatpush3.bf16.msra.mxu0 %v1027_v45  ;;  %v81_v45 = vld [vmem:[#allocation7 + $0x78] sm:$0xff] }
  0x51   :  { %v1061_v48 = vpack.c.bf16 %v81_v45, %v80_v44 }
  0x53   :  { %980 = vmatmul.mubr.msk.f32.vlgmr.msra.gmra.mrb[4].mxu0 %vm87_vm0, %v62_v15 }
 0x114   :  { %v937_v23 = vpop.f32.mrb[0].mxu0 }
 0x115   :  { %v166_v24 = vadd.f32 %v937_v23, %v86_v21  ;;  %v948_v25 = vpop.f32.mrb[0].mxu1  ;;  %v160_v26 = vpop.f32.mrb[1].mxu0 }
 0x116   :  { %v245_v27 = vadd.f32 %v948_v25, %v172_v22  ;;  %v161_v28 = vadd.f32 %v160_v26, %v86_v21  ;;  %v239_v29 = vpop.f32.mrb[1].mxu1  ;;  %v250_v21 = vsub.s32 2, %v1267_v17 }
 0x117   :  { %v240_v30 = vadd.f32 %v239_v29, %v172_v22 }
 0x118   :  { %v571_v31 = vmul.f32 %v245_v27, %v166_v24  ;;  %986 = vmatprep.mubr.msk.f32.mxu1 %vm87_vm0, %v161_v28  ;;  %v251_v23 = vrot.slane %v1273_v19, %v250_v21 }
 0x119   :  { %v570_v32 = vmul.f32 %v240_v30, %v161_v28 }
 0x11a   :  { %v575_v38 = vsel %vm87_vm0, %v571_v31, 0.0 }
 0x11b   :  { %v572_v33 = vsel %vm87_vm0, %v570_v32, 0.0 }
 0x11c   :  { %573 = vadd.xlane.f32.xlu0 %v572_v33 }
 0x11d   :  { %v970_v34 = vpop.f32.mrb[2].mxu1 }
 0x11e   :  { %v405_v35 = vadd.f32 %v970_v34, %v172_v22  ;;  %v399_v36 = vpop.f32.mrb[3].mxu1  ;;  %v959_v8 = vpop.f32.mrb[2].mxu0 }
 0x11f   :  { %v400_v37 = vadd.f32 %v399_v36, %v172_v22  ;;  %v318_v22 = vpop.f32.mrb[3].mxu0  ;;  %v324_v50 = vadd.f32 %v959_v8, %v251_v23 }
 0x120   :  { %576 = vadd.xlane.f32.xlu0 %v575_v38  ;;  %v319_v46 = vadd.f32 %v318_v22, %v251_v23 }
 0x121   :  { %v1047_v39 = vpack.c.bf16 %v405_v35, %v400_v37 }
 0x123   :  { %1049 = vmatprep.subr.msk.bf16.mxu1 %vm1048_vm1, %v1047_v39 }
 0x124   :  { %1052 = vmatpush3.bf16.xpose.msk.msra.mxu1 %vm1048_vm1, %v1047_v39 }
 0x125   :  { %1058 = vmatprep.subr.bf16.mxu1 %v1057_v43 }
 0x12b   :  { %987 = vmatmul.mubr.msk.f32.vlgmr.msra.gmra.mrb[4].mxu1 %vm87_vm0, %v166_v24  ;;  %v981_v24 = vpop.f32.mrb[4].mxu0 }
 0x12c   :  { %v480_v25 = vadd.f32 %v981_v24, %v251_v23  ;;  %v474_v26 = vpop.f32.mrb[5].mxu0  ;;  %1060 = vmatpush3.bf16.msra.mxu1 %v1057_v43 }
 0x12d   :  { %v475_v27 = vadd.f32 %v474_v26, %v251_v23  ;;  %1062 = vmatprep.subr.bf16.mxu1 %v1061_v48 }
 0x12f   :  { %v1053_v28 = vpack.c.bf16 %v480_v25, %v475_v27 }
 0x130   :  { %1064 = vmatpush3.bf16.msra.mxu1 %v1061_v48 }
 0x131   :  { %1054 = vmatprep.subr.bf16.mxu0 %v1053_v28 }
 0x132   :  { %1056 = vmatpush3.bf16.msra.mxu0 %v1053_v28 }
 0x1a9   :  { %v574_v60 = vpop.xlane.xlu0 %573 }
 0x1ad   :  { %v577_v0 = vpop.xlane.xlu0 %576 }
 0x1fe   :  { %v988_v61 = vpop.f32.mrb[4].mxu1 }
 0x1ff   :  { %v600_v62 = vsel %vm598_vm2, %v988_v61, -inf  ;;  %v561_v63 = vpop.f32.mrb[5].mxu1 }
 0x200   :  { %v599_v1 = vsel %vm597_vm3, %v561_v63, -inf  ;;  %v602_v3 = vsel %vm584_vm5, %v577_v0, %v600_v62 }
 0x201   :  { %v601_v2 = vsel %vm583_vm4, %v574_v60, %v599_v1  ;;  %v604_v6 = vmul.f32 0.17677669, %v602_v3 }
 0x202   :  { %v603_v4 = vmul.f32 0.17677669, %v601_v2 }
 0x203   :  { %v609_v7 = vsel %vm605_vm6, %v604_v6, -inf }
 0x204   :  { %v606_v5 = vsel %vm605_vm6, %v603_v4, -inf }
 0x205   :  { %607 = vmax.xlane.f32.xlu1 %v606_v5 }
 0x209   :  { %610 = vmax.xlane.f32.xlu1 %v609_v7 }
 0x292   :  { %v608_v9 = vpop.xlane.xlu1 %607 }
 0x293   :  { %v612_v10 = vsub.f32 %v603_v4, %v608_v9 }
 0x295   :  { %v614_v11 = vmul.f32 1.442695, %v612_v10 }
 0x296   :  { %v611_v12 = vpop.xlane.xlu1 %610 }
 0x297   :  { %1071 = vpow2.f32 %v614_v11  ;;  %v613_v13 = vsub.f32 %v604_v6, %v611_v12 }
 0x299   :  { %v616_v14 = vmul.f32 1.442695, %v613_v13 }
 0x29b   :  { %1073 = vpow2.f32 %v616_v14 }
 0x2a1   :  { %v1072_v15 = vpop.eup %1071 }
 0x2a2   :  { %v618_v16 = vsel %vm605_vm6, %v1072_v15, 0.0 }
 0x2a3   :  { %619 = vadd.xlane.f32.xlu0 %v618_v16 }
 0x2a5   :  { %v1074_v18 = vpop.eup %1073 }
 0x2a6   :  { %v621_v20 = vsel %vm605_vm6, %v1074_v18, 0.0 }
 0x2a7   :  { %622 = vadd.xlane.f32.xlu1 %v621_v20  ;;  %v841_v20 = vsub.s32 5, %v1267_v17 }
 0x2a9   :  { %v842_v25 = vrot.slane %v1273_v19, %v841_v20 }
 0x330   :  { %v620_v29 = vpop.xlane.xlu0 %619 }
 0x331   :  { %1075 = vrcp.f32 %v620_v29 }
 0x334   :  { %v623_v30 = vpop.xlane.xlu1 %622 }
 0x335   :  { %1077 = vrcp.f32 %v623_v30 }
 0x33b   :  { %v1076_v31 = vpop.eup %1075 }
 0x33c   :  { %v625_v32 = vmul.f32 %v1076_v31, %v1072_v15 }
 0x33e   :  { %v628_v33 = vsel %vm583_vm4, 0.0, %v625_v32  ;;  %v630_v34 = vsel %vm583_vm4, %v625_v32, 0.0 }
 0x33f   :  { %v1078_v35 = vpop.eup %1077  ;;  %993 = vmatprep.mubr.msk.f32.mxu0 %vm605_vm6, %v628_v33  ;;  %v632_v36 = vsel %vm605_vm6, %v630_v34, 0.0 }
 0x340   :  { %633 = vadd.xlane.f32.xlu0 %v632_v36  ;;  %v627_v37 = vmul.f32 %v1078_v35, %v1074_v18  ;;  %v835_v18 = vsub.s32 4, %v1267_v17 }
 0x342   :  { %v629_v38 = vsel %vm584_vm5, 0.0, %v627_v37  ;;  %v631_v39 = vsel %vm584_vm5, %v627_v37, 0.0  ;;  %v836_v21 = vrot.slane %v1273_v19, %v835_v18 }
 0x343   :  { %994 = vmatmul.mubr.msk.f32.vlgmr.msra.gmra.mrb[6].mxu0 %vm605_vm6, %v629_v38  ;;  %v635_v40 = vsel %vm605_vm6, %v631_v39, 0.0 }
 0x344   :  { %636 = vadd.xlane.f32.xlu1 %v635_v40 }
 0x3cd   :  { %v634_v51 = vpop.xlane.xlu0 %633 }
 0x3ce   :  { %v638_v52 = vmul.f32 %v634_v51, %v319_v46 }
 0x3d1   :  { %v637_v49 = vpop.xlane.xlu1 %636 }
 0x3d2   :  { %v639_v47 = vmul.f32 %v637_v49, %v324_v50 }
 0x416   :  { %v995_v53 = vpop.f32.mrb[6].mxu0 }
 0x417   :  { %v718_v54 = vadd.f32 %v995_v53, %v639_v47  ;;  %v712_v55 = vpop.f32.mrb[7].mxu0 }
 0x418   :  { %v713_v56 = vadd.f32 %v712_v55, %v638_v52 }
 0x41a   :  { %1004 = vmatprep.mubr.msk.f32.mxu1 %vm87_vm0, %v713_v56 }
 0x41b   :  { %1005 = vmatmul.mubr.msk.f32.vlgmr.msra.gmra.mrb[6].mxu1 %vm87_vm0, %v718_v54 }
 0x4ee   :  { %v1006_v59 = vpop.f32.mrb[6].mxu1 }
 0x4ef   :  { %v803_v60 = vadd.f32 %v1006_v59, %v724_v58  ;;  %v797_v61 = vpop.f32.mrb[7].mxu1 }
 0x4f0   :  { %v798_v62 = vadd.f32 %v797_v61, %v724_v58 }
 0x4f1   :  { %v809_v63 = vsel %vm87_vm0, %v803_v60, 0.0 }
 0x4f2   :  { %810 = vadd.xlane.f32.xlu1 %v809_v63  ;;  %v806_v0 = vsel %vm87_vm0, %v798_v62, 0.0 }
 0x4f3   :  { %807 = vadd.xlane.f32.xlu0 %v806_v0 }
 0x57f   :  { %v811_v1 = vpop.xlane.xlu1 %810 }
 0x580   :  { %v814_v2 = vmul.f32 0.03125, %v811_v1  ;;  %v808_v3 = vpop.xlane.xlu0 %807 }
 0x581   :  { %v813_v4 = vmul.f32 0.03125, %v808_v3 }
 0x582   :  { %v816_v5 = vsub.f32 %v803_v60, %v814_v2 }
 0x583   :  { %v815_v6 = vsub.f32 %v798_v62, %v813_v4 }
 0x584   :  { %v818_v7 = vmul.f32 %v816_v5, %v816_v5 }
 0x585   :  { %v817_v8 = vmul.f32 %v815_v6, %v815_v6 }
 0x586   :  { %v822_v9 = vsel %vm87_vm0, %v818_v7, 0.0 }
 0x587   :  { %823 = vadd.xlane.f32.xlu1 %v822_v9  ;;  %v819_v10 = vsel %vm87_vm0, %v817_v8, 0.0 }
 0x588   :  { %820 = vadd.xlane.f32.xlu0 %v819_v10 }
 0x614   :  { %v824_v11 = vpop.xlane.xlu1 %823 }
 0x615   :  { %v826_v12 = vmul.f32 0.03125, %v824_v11  ;;  %v821_v13 = vpop.xlane.xlu0 %820 }
 0x616   :  { %v825_v14 = vmul.f32 0.03125, %v821_v13 }
 0x617   :  { %v828_v15 = vadd.f32 1e-12, %v826_v12 }
 0x618   :  { %v827_v16 = vadd.f32 1e-12, %v825_v14 }
 0x619   :  { %1079 = vrsqrt.f32 %v828_v15 }
 0x61a   :  { %1081 = vrsqrt.f32 %v827_v16 }
 0x623   :  { %v1080_v22 = vpop.eup %1079 }
 0x624   :  { %v1082_v23 = vpop.eup %1081  ;;  %v832_v24 = vmul.f32 %v1080_v22, %v816_v5 }
 0x625   :  { %v831_v26 = vmul.f32 %v1082_v23, %v815_v6 }
 0x626   :  { %v838_v27 = vmul.f32 %v836_v21, %v832_v24 }
 0x627   :  { %v837_v28 = vmul.f32 %v836_v21, %v831_v26 }
 0x628   :  { %v844_v29 = vadd.f32 %v842_v25, %v838_v27 }
 0x629   :  { %v843_v30 = vadd.f32 %v842_v25, %v837_v28 }
 0x62a   :  { %846 = vst.msk [vmem:[#allocation8 + $0x8] sm:$0xff] %vm87_vm0, %v844_v29 }
 0x62b   :  { %845 = vst.msk [vmem:[#allocation8] sm:$0xff] %vm87_vm0, %v843_v30 }
 0x62c   :  { %1160 = shalt.err (!%p1157_p0)
}
 0x62d   :  { %s1161_s6 = scalar_lea.hbm %s1360_s4, 256 }
 0x62e   :  { %p1162_p1 = scmp.ne.s32.totalorder %s1360_s4, %s1161_s6  ;;  %p1165_p2 = scmp.lt.u32.totalorder %s1161_s6, %s1360_s4 }
 0x630   :  { %p1167_p3 = pnand %p1165_p2, %p1162_p1 }
 0x632   :  { %1170 = shalt.err (!%p1167_p3)
}
 0x633   :  { %858 = dma.vmem_to_hbm [thread:$0]  %s853_s26, 256, %s1360_s4, [#allocation4], %s1179_s27, %s1179_s27, %s1180_s28  }
 0x634   :  { %1175 = dma.done.wait [#allocation4], 256  }
 0x635   :  { %1176 = vsyncadd [#allocation4], 4294967040 }
 0x636   :  { %862 = vsyncpa [#allocation3], 1 }
 0x637   :  { %863 = vsyncpa [#allocation6], 1 }
 0x638   :  { %864 = vsyncpa [#allocation4], 1 }

</bundles_post_ra>
